<compile_context>
chip_gen: v5e
topology: v5e:2x2
jax: 0.10.0
libtpu: 0.0.40
codegen_flags: <defaults>
</compile_context>

<pallas_src>
import jax
import jax.numpy as jnp
from jax.experimental import pallas as pl
from jax.experimental.pallas import tpu as pltpu

_LANE = 128     # TPU lane width
_SUBLANE = 8    # f32 sublane packing


def _round_up(x, m):
    return ((x + m - 1) // m) * m


def _mlp_kernel(x_ref, w1_ref, b1_ref, w2_ref, b2_ref, o_ref):
    # Layer 1: (block_m, dim) @ (dim, H_PAD) -> f32 accumulator on the MXU.
    h = jnp.dot(x_ref[...], w1_ref[...], preferred_element_type=jnp.float32)
    # Fused bias + ReLU on the VPU (f32).
    h = jnp.maximum(h + b1_ref[...].astype(jnp.float32), 0.0)
    # Layer 2: keep h in f32 (no silent downcast of the accumulator).
    out = jnp.dot(h, w2_ref[...].astype(jnp.float32),
                  preferred_element_type=jnp.float32)
    out = out + b2_ref[...].astype(jnp.float32)
    o_ref[...] = out.astype(o_ref.dtype)


def feed_forward_classifier(x, w1, b1, w2, b2, *, block_m=None):
    """x: (B, dim), w1: (dim, hidden), b1: (hidden,), w2: (hidden, out_dim), b2: (out_dim,).

    Weights are stored transposed relative to torch.nn.Linear's (out, in).
    Returns (B, out_dim) = ReLU(x @ w1 + b1) @ w2 + b2.
    """
    B, dim = x.shape
    hidden = w1.shape[1]
    out_dim = w2.shape[1]

    # --- lane-dense padding of the tiny feature dims -------------------------
    h_pad = _round_up(max(hidden, _LANE), _LANE)     # 16  -> 128
    o_pad = _round_up(max(out_dim, _LANE), _LANE)    # 10  -> 128

    wdt = w1.dtype
    w1_p = jnp.zeros((dim, h_pad), wdt).at[:, :hidden].set(w1)
    b1_p = jnp.zeros((1, h_pad), wdt).at[0, :hidden].set(b1)
    w2_p = jnp.zeros((h_pad, o_pad), wdt).at[:hidden, :out_dim].set(w2)
    b2_p = jnp.zeros((1, o_pad), wdt).at[0, :out_dim].set(b2)
    # (Padded hidden columns compute ReLU(0)=0 and hit zero rows of w2_p, so
    #  the padding is exactly zero-contribution -> numerics unchanged.)

    # --- batch tiling ---------------------------------------------------------
    if block_m is None:
        # ~512-row tiles amortize per-step overhead and reach ~85% of HBM
        # roofline; smaller batches get one full (8-aligned) tile.
        block_m = min(512, _round_up(B, _SUBLANE))
    block_m = _round_up(block_m, _SUBLANE)

    b_pad = _round_up(B, block_m)
    x_p = x if b_pad == B else jnp.pad(x, ((0, b_pad - B), (0, 0)))

    grid = (b_pad // block_m,)

    # --- VMEM / cost budgeting ------------------------------------------------
    itemsize = x.dtype.itemsize
    # double-buffered X tile + double-buffered output tile + resident weights
    tile_bytes = 2 * block_m * dim * itemsize + 2 * block_m * o_pad * itemsize
    tile_bytes += (dim * h_pad + h_pad + h_pad * o_pad + o_pad) * w1_p.dtype.itemsize
    # Stay well inside v7x's 64 MiB physical VMEM; lift v5e's 16 MiB default.
    vmem_limit = int(min(max(4 * tile_bytes, 16 << 20), 32 << 20))

    cost = pl.CostEstimate(
        flops=2 * B * dim * hidden + 2 * B * hidden * out_dim,
        transcendentals=0,
        bytes_accessed=(B * dim + B * out_dim) * itemsize
        + (dim * hidden + hidden + hidden * out_dim + out_dim) * w1.dtype.itemsize,
    )

    out_padded = pl.pallas_call(
        _mlp_kernel,
        out_shape=jax.ShapeDtypeStruct((b_pad, o_pad), x.dtype),
        grid_spec=pltpu.PrefetchScalarGridSpec(
            num_scalar_prefetch=0,
            grid=grid,
            in_specs=[
                pl.BlockSpec((block_m, dim), lambda i: (i, 0)),     # X tile (streamed)
                pl.BlockSpec((dim, h_pad), lambda i: (0, 0)),       # W1 (resident)
                pl.BlockSpec((1, h_pad), lambda i: (0, 0)),         # b1 (resident)
                pl.BlockSpec((h_pad, o_pad), lambda i: (0, 0)),     # W2 (resident)
                pl.BlockSpec((1, o_pad), lambda i: (0, 0)),         # b2 (resident)
            ],
            out_specs=pl.BlockSpec((block_m, o_pad), lambda i: (i, 0)),
        ),
        compiler_params=pltpu.CompilerParams(
            dimension_semantics=("parallel",),
            vmem_limit_bytes=vmem_limit,
        ),
        cost_estimate=cost,
    )(x_p, w1_p, b1_p, w2_p, b2_p)

    return out_padded[:B, :out_dim]


def _torch_like_linear_init(key, fan_in, fan_out, dtype=jnp.float32):
    """Deterministic init mimicking torch.nn.Linear (uniform +/- 1/sqrt(fan_in))."""
    kw, kb = jax.random.split(key)
    bound = 1.0 / jnp.sqrt(jnp.asarray(fan_in, dtype=jnp.float32))
    # Stored as (fan_in, fan_out) == transpose of PyTorch's (out, in).
    w = jax.random.uniform(kw, (fan_in, fan_out), dtype, -bound, bound)
    b = jax.random.uniform(kb, (fan_out,), dtype, -bound, bound)
    return w, b


def _reference(x, w1, b1, w2, b2):
    h = jnp.maximum(x @ w1 + b1, 0.0)
    return h @ w2 + b2


if __name__ == "__main__":
    key = jax.random.PRNGKey(0)
    k_x, k_l1, k_l2 = jax.random.split(key, 3)

    # Small shapes consistent with the module: X: (batch, dim).
    batch, dim, hidden, out_dim = 64, 32, 16, 10

    x = jax.random.normal(k_x, (batch, dim), dtype=jnp.float32)
    w1, b1 = _torch_like_linear_init(k_l1, dim, hidden)      # Linear(dim, 16)
    w2, b2 = _torch_like_linear_init(k_l2, hidden, out_dim)  # Linear(16, out_dim)

    ref = _reference(x, w1, b1, w2, b2)

    # 1) default tiling (single tile for this small batch)
    out = jax.block_until_ready(feed_forward_classifier(x, w1, b1, w2, b2))
    assert out.shape == (batch, out_dim)
    assert jnp.allclose(out, ref, atol=1e-5, rtol=1e-5), "mismatch (default tiling)"

    # 2) explicit multi-step grid (4 pipelined steps over the batch)
    out2 = jax.block_until_ready(
        feed_forward_classifier(x, w1, b1, w2, b2, block_m=16))
    assert jnp.allclose(out2, ref, atol=1e-5, rtol=1e-5), "mismatch (block_m=16)"

    # 3) ragged batch (padded internally and sliced back)
    xr = x[:50]
    out3 = jax.block_until_ready(
        feed_forward_classifier(xr, w1, b1, w2, b2, block_m=16))
    assert out3.shape == (50, out_dim)
    assert jnp.allclose(out3, ref[:50], atol=1e-5, rtol=1e-5), "mismatch (ragged batch)"

    print("KERNEL_OK")
</pallas_src>

<mosaic_0001>
module attributes {stable_mosaic.version = 11 : i64} {
  func.func @_mlp_kernel(%arg0: i32, %arg1: memref<64x32xf32, #tpu.memory_space<vmem>>, %arg2: memref<32x128xf32, #tpu.memory_space<vmem>>, %arg3: memref<1x128xf32, #tpu.memory_space<vmem>>, %arg4: memref<128x128xf32, #tpu.memory_space<vmem>>, %arg5: memref<1x128xf32, #tpu.memory_space<vmem>>, %arg6: memref<64x128xf32, #tpu.memory_space<vmem>>) attributes {dimension_semantics = [#tpu.dimension_semantics<parallel>], iteration_bounds = array<i64: 1>, scalar_prefetch = 0 : i64, scratch_operands = 0 : i64, tpu.core_type = #tpu.core_type<tc>, window_params = [{transform_indices = @transform_0, window_bounds = array<i64: 64, 32>}, {pipeline_mode = #tpu.pipeline_mode<synchronous>, transform_indices = @transform_1, window_bounds = array<i64: 32, 128>}, {pipeline_mode = #tpu.pipeline_mode<synchronous>, transform_indices = @transform_2, window_bounds = array<i64: 1, 128>}, {pipeline_mode = #tpu.pipeline_mode<synchronous>, transform_indices = @transform_3, window_bounds = array<i64: 128, 128>}, {pipeline_mode = #tpu.pipeline_mode<synchronous>, transform_indices = @transform_4, window_bounds = array<i64: 1, 128>}, {transform_indices = @transform_5, window_bounds = array<i64: 64, 128>}]} {
    %c0 = arith.constant 0 : index
    %c0_0 = arith.constant 0 : index
    %0 = vector.load %arg1[%c0, %c0_0] : memref<64x32xf32, #tpu.memory_space<vmem>>, vector<64x32xf32>
    %c0_1 = arith.constant 0 : index
    %c0_2 = arith.constant 0 : index
    %1 = vector.load %arg2[%c0_1, %c0_2] : memref<32x128xf32, #tpu.memory_space<vmem>>, vector<32x128xf32>
    %cst = arith.constant dense<0.000000e+00> : vector<64x128xf32>
    %2 = tpu.matmul %0, %1, %cst {dimension_numbers = #tpu.dot_dimension_numbers<[1], [0], [0], [1], [0, 0, 1, 1], [], []>} : vector<64x32xf32>, vector<32x128xf32>, vector<64x128xf32> -> vector<64x128xf32>
    %c0_3 = arith.constant 0 : index
    %c0_4 = arith.constant 0 : index
    %3 = vector.load %arg3[%c0_3, %c0_4] : memref<1x128xf32, #tpu.memory_space<vmem>>, vector<1x128xf32>
    %4 = vector.broadcast %3 : vector<1x128xf32> to vector<64x128xf32>
    %5 = arith.addf %2, %4 : vector<64x128xf32>
    %cst_5 = arith.constant 0.000000e+00 : f32
    %6 = vector.broadcast %cst_5 : f32 to vector<64x128xf32>
    %7 = arith.maximumf %5, %6 : vector<64x128xf32>
    %c0_6 = arith.constant 0 : index
    %c0_7 = arith.constant 0 : index
    %8 = vector.load %arg4[%c0_6, %c0_7] : memref<128x128xf32, #tpu.memory_space<vmem>>, vector<128x128xf32>
    %cst_8 = arith.constant dense<0.000000e+00> : vector<64x128xf32>
    %9 = tpu.matmul %7, %8, %cst_8 {dimension_numbers = #tpu.dot_dimension_numbers<[1], [0], [0], [1], [0, 0, 1, 1], [], []>} : vector<64x128xf32>, vector<128x128xf32>, vector<64x128xf32> -> vector<64x128xf32>
    %c0_9 = arith.constant 0 : index
    %c0_10 = arith.constant 0 : index
    %10 = vector.load %arg5[%c0_9, %c0_10] : memref<1x128xf32, #tpu.memory_space<vmem>>, vector<1x128xf32>
    %11 = vector.broadcast %10 : vector<1x128xf32> to vector<64x128xf32>
    %12 = arith.addf %9, %11 : vector<64x128xf32>
    %c0_11 = arith.constant 0 : index
    %c0_12 = arith.constant 0 : index
    %13 = vector.load %arg6[%c0_11, %c0_12] : memref<64x128xf32, #tpu.memory_space<vmem>>, vector<64x128xf32>
    tpu.vector_store %arg6[%c0_11, %c0_12], %12 {strides = array<i32>} : memref<64x128xf32, #tpu.memory_space<vmem>>, vector<64x128xf32>,
    return
  }
  func.func @transform_0(%arg0: i32) -> (i32, i32) {
    %c0_i32 = arith.constant 0 : i32
    %c0_i32_0 = arith.constant 0 : i32
    return %arg0, %c0_i32 : i32, i32
  }
  func.func @transform_1(%arg0: i32) -> (i32, i32) {
    %c0_i32 = arith.constant 0 : i32
    %c0_i32_0 = arith.constant 0 : i32
    %c0_i32_1 = arith.constant 0 : i32
    return %c0_i32, %c0_i32_0 : i32, i32
  }
  func.func @transform_2(%arg0: i32) -> (i32, i32) {
    %c0_i32 = arith.constant 0 : i32
    %c0_i32_0 = arith.constant 0 : i32
    %c0_i32_1 = arith.constant 0 : i32
    return %c0_i32, %c0_i32_0 : i32, i32
  }
  func.func @transform_3(%arg0: i32) -> (i32, i32) {
    %c0_i32 = arith.constant 0 : i32
    %c0_i32_0 = arith.constant 0 : i32
    %c0_i32_1 = arith.constant 0 : i32
    return %c0_i32, %c0_i32_0 : i32, i32
  }
  func.func @transform_4(%arg0: i32) -> (i32, i32) {
    %c0_i32 = arith.constant 0 : i32
    %c0_i32_0 = arith.constant 0 : i32
    %c0_i32_1 = arith.constant 0 : i32
    return %c0_i32, %c0_i32_0 : i32, i32
  }
  func.func @transform_5(%arg0: i32) -> (i32, i32) {
    %c0_i32 = arith.constant 0 : i32
    %c0_i32_0 = arith.constant 0 : i32
    return %arg0, %c0_i32 : i32, i32
  }
}

</mosaic_0001>

<bundles_post_ra>
// kernel: tpu_custom_call.1
= control target key start
LH: loop header
LB: loop body
LE: loop exit
PB: predicated region body
PF: predicated region fallthrough
CT: control target
= control target key end

     0   :  { %10 = vsyncpa [#allocation3], 0  ;;  %s413_s0 = inlined_call_operand.vmem [shape: f32[64,32], index: 0, kind: input, shape index: {}]   ;;  %s414_s1 = inlined_call_operand.vmem [shape: f32[32,128], index: 1, kind: input, shape index: {}]   ;;  %s415_s2 = inlined_call_operand.vmem [shape: f32[1,128], index: 2, kind: input, shape index: {}]   ;;  %s416_s3 = inlined_call_operand.hbm [shape: f32[128,128], index: 3, kind: input, shape index: {}]   ;;  %s417_s4 = inlined_call_operand.vmem [shape: f32[1,128], index: 4, kind: input, shape index: {}]   ;;  %s418_s5 = inlined_call_operand.hbm [shape: f32[64,128], index: 5, kind: output, shape index: {}]  }
   0x1   :  { %11 = vsyncpa [#allocation4], 0  ;;  %s22_s20 = sshll.u32 %s416_s3, 4  ;;  %s317_s21 = smov [#allocation2]   ;;  %s23_s20 = int_to_ptr.hbm [resolvable:$true] %s22_s20 }
   0x2   :  { %s24_s22 = sshll.u32 %s317_s21, 4  ;;  %s318_s23 = smov 128   ;;  %s25_s22 = int_to_ptr.vmem [resolvable:$true] %s24_s22 }
   0x3   :  { %s319_s24 = smov 8  }
   0x4   :  { %30 = dma.hbm_to_vmem [thread:$0]  %s23_s20, 2048, %s25_s22, [#allocation3], %s318_s23, %s318_s23, %s319_s24  }
   0x5   :  { %313 = dma.done.wait [#allocation3], 2048  }
   0x6   :  { %314 = vsyncadd [#allocation3], 4294965248  ;;  %v48_v0 = vld [vmem:[%s414_s1 + $0x18] sm:$0xff]  ;;  %v47_v1 = vld [vmem:[%s414_s1 + $0x10] sm:$0xff]  ;;  %vm53_vm0 = vcmask 261120   ;;  %s202_s3 = sshll.u32 %s418_s5, 4  ;;  %s203_s3 = int_to_ptr.hbm [resolvable:$true] %s202_s3 }
   0x7   :  { %90 = vmatpush.msra.mxu0 %v48_v0  ;;  %223 = vmatpush.msra.mxu3 %v48_v0  ;;  %v46_v2 = vld [vmem:[%s414_s1 + $0x8] sm:$0xff]  ;;  %v45_v3 = vld [vmem:[%s414_s1] sm:$0xff]  ;;  %v43_v5 = vld [vmem:[%s413_s0 + $0x30] sm:$0xff] }
   0x8   :  { %v37_v4 = vld [vmem:[%s413_s0] sm:$0xff]  ;;  %v38_v6 = vld [vmem:[%s413_s0 + $0x8] sm:$0xff]  ;;  %v44_v7 = vld [vmem:[%s413_s0 + $0x38] sm:$0xff] }
   0x9   :  { %91 = vmatpush.msra.mxu0 %v47_v1  ;;  %224 = vmatpush.msra.mxu3 %v47_v1  ;;  %v142_v8 = vld [vmem:[#allocation2 + $0x78] sm:$0xff]  ;;  %v141_v9 = vld [vmem:[#allocation2 + $0x70] sm:$0xff]  ;;  %v140_v10 = vld [vmem:[#allocation2 + $0x68] sm:$0xff] }
   0xa   :  { %147 = vmatpush.msra.mxu1 %v142_v8  ;;  %227 = vmatpush.msra.mxu2 %v142_v8  ;;  %v139_v11 = vld [vmem:[#allocation2 + $0x60] sm:$0xff]  ;;  %v39_v12 = vld [vmem:[%s413_s0 + $0x10] sm:$0xff]  ;;  %v138_v13 = vld [vmem:[#allocation2 + $0x58] sm:$0xff] }
   0xb   :  { %92 = vmatpush.msra.mxu0 %v46_v2  ;;  %225 = vmatpush.msra.mxu3 %v46_v2  ;;  %v137_v14 = vld [vmem:[#allocation2 + $0x50] sm:$0xff]  ;;  %v136_v15 = vld [vmem:[#allocation2 + $0x48] sm:$0xff]  ;;  %v135_v16 = vld [vmem:[#allocation2 + $0x40] sm:$0xff] }
   0xc   :  { %148 = vmatpush.msra.mxu1 %v141_v9  ;;  %229 = vmatpush.msra.mxu2 %v141_v9  ;;  %v40_v17 = vld [vmem:[%s413_s0 + $0x18] sm:$0xff]  ;;  %v133_v19 = vld [vmem:[#allocation2 + $0x30] sm:$0xff]  ;;  %v132_v20 = vld [vmem:[#allocation2 + $0x28] sm:$0xff] }
   0xd   :  { %93 = vmatpush.msra.mxu0 %v45_v3  ;;  %226 = vmatpush.msra.mxu3 %v45_v3  ;;  %v134_v18 = vld [vmem:[#allocation2 + $0x38] sm:$0xff]  ;;  %v131_v21 = vld [vmem:[#allocation2 + $0x20] sm:$0xff]  ;;  %v42_v24 = vld [vmem:[%s413_s0 + $0x28] sm:$0xff] }
   0xe   :  { %215 = vmatmul.msk.f32.vlgmr.msra.gmra.mxu0 %vm53_vm0, %v37_v4  ;;  %221 = vmatmul.msk.f32.vlgmr.msra.gmra.mxu3 %vm53_vm0, %v43_v5  ;;  %v41_v22 = vld [vmem:[%s413_s0 + $0x20] sm:$0xff]  ;;  %v130_v23 = vld [vmem:[#allocation2 + $0x18] sm:$0xff]  ;;  %v129_v25 = vld [vmem:[#allocation2 + $0x10] sm:$0xff] }
   0xf   :  { %228 = vmatpush.msrb.mxu3 %v142_v8  ;;  %149 = vmatpush.msra.mxu1 %v140_v10  ;;  %v128_v26 = vld [vmem:[#allocation2 + $0x8] sm:$0xff]  ;;  %v127_v27 = vld [vmem:[#allocation2] sm:$0xff] }
  0x10   :  { %231 = vmatpush.msra.mxu2 %v140_v10  ;;  %v263_v28 = vld [vmem:[%s415_s2] ss:$0 sm:$0xff] }
  0x11   :  { %230 = vmatpush.msrb.mxu3 %v141_v9  ;;  %150 = vmatpush.msra.mxu1 %v139_v11  ;;  %v264_v53 = vld [vmem:[%s417_s4] ss:$0 sm:$0xff]  ;;  %s320_s4 = smov [#allocation5]  }
  0x12   :  { %233 = vmatpush.msra.mxu2 %v139_v11  ;;  %s200_s26 = sshll.u32 %s320_s4, 4  ;;  %s201_s26 = int_to_ptr.vmem [resolvable:$true] %s200_s26 }
  0x13   :  { %232 = vmatpush.msrb.mxu3 %v140_v10  ;;  %151 = vmatpush.msra.mxu1 %v138_v13 }
  0x14   :  { %235 = vmatpush.msra.mxu2 %v138_v13 }
  0x15   :  { %234 = vmatpush.msrb.mxu3 %v139_v11  ;;  %152 = vmatpush.msra.mxu1 %v137_v14 }
  0x16   :  { %216 = vmatmul.msk.f32.gmra.mxu0 %vm53_vm0, %v38_v6  ;;  %222 = vmatmul.msk.f32.gmra.mxu3 %vm53_vm0, %v44_v7 }
  0x17   :  { %236 = vmatpush.msrb.mxu3 %v138_v13  ;;  %237 = vmatpush.msra.mxu2 %v137_v14 }
  0x18   :  { %153 = vmatpush.msra.mxu1 %v136_v15 }
  0x19   :  { %238 = vmatpush.msrb.mxu3 %v137_v14  ;;  %239 = vmatpush.msra.mxu2 %v136_v15 }
  0x1a   :  { %154 = vmatpush.msra.mxu1 %v135_v16 }
  0x1b   :  { %240 = vmatpush.msrb.mxu3 %v136_v15  ;;  %241 = vmatpush.msra.mxu2 %v135_v16 }
  0x1c   :  { %155 = vmatpush.msra.mxu1 %v134_v18 }
  0x1d   :  { %242 = vmatpush.msrb.mxu3 %v135_v16  ;;  %243 = vmatpush.msra.mxu2 %v134_v18 }
  0x1e   :  { %217 = vmatmul.msk.f32.gmra.mxu0 %vm53_vm0, %v39_v12  ;;  %156 = vmatpush.msra.mxu1 %v133_v19 }
  0x1f   :  { %244 = vmatpush.msrb.mxu3 %v134_v18  ;;  %245 = vmatpush.msra.mxu2 %v133_v19 }
  0x20   :  { %157 = vmatpush.msra.mxu1 %v132_v20 }
  0x21   :  { %246 = vmatpush.msrb.mxu3 %v133_v19  ;;  %247 = vmatpush.msra.mxu2 %v132_v20 }
  0x22   :  { %158 = vmatpush.msra.mxu1 %v131_v21 }
  0x23   :  { %248 = vmatpush.msrb.mxu3 %v132_v20  ;;  %249 = vmatpush.msra.mxu2 %v131_v21 }
  0x24   :  { %159 = vmatpush.msra.mxu1 %v130_v23 }
  0x25   :  { %250 = vmatpush.msrb.mxu3 %v131_v21  ;;  %251 = vmatpush.msra.mxu2 %v130_v23 }
  0x26   :  { %218 = vmatmul.msk.f32.gmra.mxu0 %vm53_vm0, %v40_v17  ;;  %160 = vmatpush.msra.mxu1 %v129_v25 }
  0x27   :  { %252 = vmatpush.msrb.mxu3 %v130_v23  ;;  %253 = vmatpush.msra.mxu2 %v129_v25 }
  0x28   :  { %161 = vmatpush.msra.mxu1 %v128_v26 }
  0x29   :  { %254 = vmatpush.msrb.mxu3 %v129_v25  ;;  %255 = vmatpush.msra.mxu2 %v128_v26 }
  0x2a   :  { %162 = vmatpush.msra.mxu1 %v127_v27 }
  0x2b   :  { %256 = vmatpush.msrb.mxu3 %v128_v26  ;;  %257 = vmatpush.msra.mxu2 %v127_v27 }
  0x2d   :  { %258 = vmatpush.msrb.mxu3 %v127_v27 }
  0x2e   :  { %219 = vmatmul.msk.f32.gmra.mxu0 %vm53_vm0, %v41_v22 }
  0x36   :  { %220 = vmatmul.msk.f32.gmra.mxu0 %vm53_vm0, %v42_v24 }
  0x8b   :  { %v95_v29 = vpop.f32.mrf.mxu0 }
  0x8c   :  { %v96_v30 = vadd.f32 %v263_v28, %v95_v29 }
  0x8e   :  { %v119_v31 = vmax.f32 %v96_v30, 0.0 }
  0x90   :  { %163 = vmatmul.f32.vlgmr.msra.gmra.mxu1 %v119_v31 }
  0x91   :  { %v113_v32 = vpop.f32.mrf.mxu3 }
  0x92   :  { %v114_v33 = vadd.f32 %v263_v28, %v113_v32 }
  0x93   :  { %v98_v34 = vpop.f32.mrf.mxu0 }
  0x94   :  { %v99_v35 = vadd.f32 %v263_v28, %v98_v34  ;;  %v125_v36 = vmax.f32 %v114_v33, 0.0 }
  0x96   :  { %v120_v37 = vmax.f32 %v99_v35, 0.0  ;;  %181 = vmatmul.f32.vlgmr.msrb.gmra.mxu3 %v125_v36 }
  0x98   :  { %166 = vmatmul.f32.gmra.mxu1 %v120_v37 }
  0x99   :  { %v116_v38 = vpop.f32.mrf.mxu3 }
  0x9a   :  { %v117_v39 = vadd.f32 %v263_v28, %v116_v38 }
  0x9b   :  { %v101_v40 = vpop.f32.mrf.mxu0 }
  0x9c   :  { %v102_v41 = vadd.f32 %v263_v28, %v101_v40  ;;  %v126_v42 = vmax.f32 %v117_v39, 0.0 }
  0x9e   :  { %v121_v43 = vmax.f32 %v102_v41, 0.0  ;;  %184 = vmatmul.f32.gmra.mxu3 %v126_v42 }
  0xa0   :  { %169 = vmatmul.f32.gmra.mxu1 %v121_v43 }
  0xa3   :  { %v104_v44 = vpop.f32.mrf.mxu0 }
  0xa4   :  { %v105_v45 = vadd.f32 %v263_v28, %v104_v44 }
  0xa6   :  { %v122_v46 = vmax.f32 %v105_v45, 0.0 }
  0xa8   :  { %172 = vmatmul.f32.vlgmr.msra.gmra.mxu2 %v122_v46 }
  0xab   :  { %v107_v47 = vpop.f32.mrf.mxu0 }
  0xac   :  { %v108_v48 = vadd.f32 %v263_v28, %v107_v47 }
  0xae   :  { %v123_v49 = vmax.f32 %v108_v48, 0.0 }
  0xb0   :  { %175 = vmatmul.f32.gmra.mxu2 %v123_v49 }
  0xb3   :  { %v110_v50 = vpop.f32.mrf.mxu0 }
  0xb4   :  { %v111_v51 = vadd.f32 %v263_v28, %v110_v50 }
  0xb6   :  { %v124_v52 = vmax.f32 %v111_v51, 0.0 }
  0xb8   :  { %178 = vmatmul.f32.gmra.mxu2 %v124_v52 }
 0x10d   :  { %v164_v54 = vpop.f32.mrf.mxu1 }
 0x10e   :  { %v165_v55 = vadd.f32 %v264_v53, %v164_v54 }
 0x110   :  { %188 = vst [vmem:[#allocation5] sm:$0xff] %v165_v55 }
 0x115   :  { %v167_v56 = vpop.f32.mrf.mxu1 }
 0x116   :  { %v168_v57 = vadd.f32 %v264_v53, %v167_v56 }
 0x118   :  { %189 = vst [vmem:[#allocation5 + $0x8] sm:$0xff] %v168_v57 }
 0x119   :  { %v182_v58 = vpop.f32.mrf.mxu3 }
 0x11a   :  { %v183_v59 = vadd.f32 %v264_v53, %v182_v58 }
 0x11c   :  { %194 = vst [vmem:[#allocation5 + $0x30] sm:$0xff] %v183_v59 }
 0x11d   :  { %v170_v60 = vpop.f32.mrf.mxu1 }
 0x11e   :  { %v171_v61 = vadd.f32 %v264_v53, %v170_v60 }
 0x120   :  { %190 = vst [vmem:[#allocation5 + $0x10] sm:$0xff] %v171_v61 }
 0x121   :  { %v185_v62 = vpop.f32.mrf.mxu3 }
 0x122   :  { %v186_v63 = vadd.f32 %v264_v53, %v185_v62 }
 0x124   :  { %195 = vst [vmem:[#allocation5 + $0x38] sm:$0xff] %v186_v63 }
 0x12b   :  { %v173_v0 = vpop.f32.mrf.mxu2 }
 0x12c   :  { %v174_v1 = vadd.f32 %v264_v53, %v173_v0 }
 0x12e   :  { %191 = vst [vmem:[#allocation5 + $0x18] sm:$0xff] %v174_v1 }
 0x133   :  { %v176_v2 = vpop.f32.mrf.mxu2 }
 0x134   :  { %v177_v3 = vadd.f32 %v264_v53, %v176_v2 }
 0x136   :  { %192 = vst [vmem:[#allocation5 + $0x20] sm:$0xff] %v177_v3 }
 0x13b   :  { %v179_v4 = vpop.f32.mrf.mxu2 }
 0x13c   :  { %v180_v5 = vadd.f32 %v264_v53, %v179_v4 }
 0x13e   :  { %193 = vst [vmem:[#allocation5 + $0x28] sm:$0xff] %v180_v5 }
 0x13f   :  { %208 = dma.vmem_to_hbm [thread:$0]  %s201_s26, 1024, %s203_s3, [#allocation4], %s318_s23, %s318_s23, %s319_s24  }
 0x140   :  { %315 = dma.done.wait [#allocation4], 1024  }
 0x141   :  { %316 = vsyncadd [#allocation4], 4294966272 }
 0x142   :  { %213 = vsyncpa [#allocation3], 1 }
 0x143   :  { %214 = vsyncpa [#allocation4], 1 }

</bundles_post_ra>
